<compile_context>
chip_gen: v6e
topology: v6e:2x2x1
jax: 0.10.0
libtpu: 0.0.40
codegen_flags: <defaults>
</compile_context>

<pallas_src>
import jax
import jax.numpy as jnp
from jax.experimental import pallas as pl
from jax.experimental.pallas import tpu as pltpu


def _height_att_kernel(x_ref, xt_ref, g_ref, o_ref):
    # x_ref / xt_ref : (bt, C, H, W) blocks, g_ref / o_ref : (bt, Cg, H, Wg).
    bt, C, H, W = x_ref.shape
    _, Cg, _, Wg = g_ref.shape

    # Full f32 matmul precision for f32 operands (HBM-bound kernel: the extra
    # MXU passes are free); bf16 operands use the native-dtype MXU path.
    prec = jax.lax.Precision.HIGHEST if x_ref.dtype == jnp.float32 else None

    # scores[b, q, k] = sum_{c,w} x[b,c,q,w] * xt[b,c,k,w]
    # Expressed as per-(b,c) trans-B matmuls over w (no transposes feeding the
    # MXU), reduced over channels on the VPU.  Leading-dim reshapes are free
    # (they never touch the minor (8,128)-tiled dims).
    x3 = x_ref[...].reshape(bt * C, H, W)
    xt3 = xt_ref[...].reshape(bt * C, H, W)
    s_c = jax.lax.dot_general(
        x3, xt3,
        dimension_numbers=(((2,), (2,)), ((0,), (0,))),
        preferred_element_type=jnp.float32,
        precision=prec)                                       # (bt*C, H, H) f32
    scores = jnp.sum(s_c.reshape(bt, C, H, H), axis=1)        # (bt, H, H) f32

    # Numerically-stable softmax over keys.  Exact divide (review correctness
    # note on the approx reciprocal); compute slots have plenty of slack.
    m = jnp.max(scores, axis=-1, keepdims=True)
    e = jnp.exp(scores - m)
    probs = e / jnp.sum(e, axis=-1, keepdims=True)            # (bt, H, H) f32

    # out[b, c, q, w] = sum_k probs[b, q, k] * g[b, c, k, w]
    # Broadcasting probs over channels keeps the result directly in NCHW
    # layout, so the store needs no in-kernel transpose.
    p_bc = jnp.broadcast_to(probs[:, None, :, :], (bt, Cg, H, H))
    p_bc = p_bc.reshape(bt * Cg, H, H).astype(g_ref.dtype)
    g3 = g_ref[...].reshape(bt * Cg, H, Wg)
    out = jax.lax.dot_general(
        p_bc, g3,
        dimension_numbers=(((2,), (1,)), ((0,), (0,))),
        preferred_element_type=jnp.float32,
        precision=prec)                                       # (bt*Cg, H, Wg) f32
    o_ref[...] = out.reshape(bt, Cg, H, Wg).astype(o_ref.dtype)


def _round_up(x, m):
    return ((x + m - 1) // m) * m


def _vmem_budgets():
    """Returns (block budget, vmem_limit_bytes), generation-aware."""
    try:
        cap = int(pltpu.get_tpu_info().vmem_capacity_bytes)
    except Exception:
        cap = None
    if cap is None:
        cap = 64 * 1024 * 1024                 # conservative: v7x per-TC VMEM
    if cap >= 96 * 1024 * 1024:                # v5e / v6e: 128 MiB VMEM
        return 48 * 1024 * 1024, 100 * 1024 * 1024
    return 20 * 1024 * 1024, 48 * 1024 * 1024  # v7x: 64 MiB per TensorCore


def _choose_block_batch(B, C, H, W, Cg, Wg, itemsize, budget):
    """Batch elements per grid step, VMEM-aware (incl. f32 intermediates)."""
    Hs = _round_up(H, 8)
    Wl, Wgl, Hl = _round_up(W, 128), _round_up(Wg, 128), _round_up(H, 128)
    # Double-buffered pipelined blocks (x, xt, g, out), per batch element,
    # using the padded (8,128) VMEM layout sizes.
    io = 2 * itemsize * (2 * C * Hs * Wl + 2 * Cg * Hs * Wgl)
    # f32 in-kernel temporaries: per-channel scores, scores/exp/probs,
    # channel-broadcast probs (cast copy), f32 output accumulator.
    tmp = 4 * (C * Hs * Hl + 3 * Hs * Hl + Cg * Hs * Hl + Cg * Hs * Wgl)
    per_batch = io + tmp
    bt = max(1, min(B, budget // max(per_batch, 1)))

    # Pick a divisor of B (no partial blocks).  Prefer an even grid so the
    # "parallel" batch axis splits evenly across v7x's two TensorCores; fall
    # back to >=2 steps, then to the largest fitting divisor.
    divisors = [d for d in range(min(bt, B), 0, -1) if B % d == 0]
    even = [d for d in divisors if (B // d) % 2 == 0]
    multi = [d for d in divisors if (B // d) >= 2]
    if even:
        return even[0]
    if multi:
        return multi[0]
    return divisors[0]


def vector_att_block_height(x_, x_t, g_x):
    """Forward pass of vectorAttBlockHeight on NCHW inputs.

    Args:
      x_, x_t: (B, C, H, W) query / key feature maps.
      g_x:     (B, Cg, H, Wg) value feature map (same B and H).
    Returns:
      (B, Cg, H, Wg) array, same dtype as the inputs.
    """
    B, C, H, W = x_.shape
    Bg, Cg, Hg, Wg = g_x.shape
    assert x_t.shape == (B, C, H, W) and Bg == B and Hg == H

    itemsize = jnp.dtype(x_.dtype).itemsize
    budget, vmem_limit = _vmem_budgets()
    bt = _choose_block_batch(B, C, H, W, Cg, Wg, itemsize, budget)

    xspec = pl.BlockSpec((bt, C, H, W), lambda b: (b, 0, 0, 0))
    gspec = pl.BlockSpec((bt, Cg, H, Wg), lambda b: (b, 0, 0, 0))

    flops = 2 * B * H * H * C * W + 2 * B * Cg * H * H * Wg
    bytes_accessed = itemsize * B * H * (2 * C * W + 2 * Cg * Wg)
    cost = pl.CostEstimate(flops=flops, transcendentals=B * H * H,
                           bytes_accessed=bytes_accessed)

    return pl.pallas_call(
        _height_att_kernel,
        out_shape=jax.ShapeDtypeStruct((B, Cg, H, Wg), x_.dtype),
        grid_spec=pltpu.PrefetchScalarGridSpec(
            num_scalar_prefetch=0,
            grid=(B // bt,),
            in_specs=[xspec, xspec, gspec],
            out_specs=gspec,
        ),
        compiler_params=pltpu.CompilerParams(
            dimension_semantics=("parallel",),
            vmem_limit_bytes=vmem_limit,
        ),
        cost_estimate=cost,
    )(x_, x_t, g_x)


def _reference(x_, x_t, g_x):
    """Pure-JAX reference mirroring the PyTorch forward (full f32 precision)."""
    B, C, H, W = x_.shape
    hi = jax.lax.Precision.HIGHEST

    def to_bhd(t):
        return jnp.transpose(t, (0, 2, 1, 3)).reshape(B, H, -1)

    xb, xtb, gb = to_bhd(x_), to_bhd(x_t), to_bhd(g_x)
    scores = jnp.einsum('bhd,bkd->bhk', xb, xtb, precision=hi)
    probs = jax.nn.softmax(scores, axis=-1)
    out = jnp.einsum('bhk,bkd->bhd', probs, gb, precision=hi)
    out = out.reshape(B, H, g_x.shape[1], g_x.shape[3])
    return jnp.transpose(out, (0, 2, 1, 3))


if __name__ == "__main__":
    key = jax.random.PRNGKey(0)
    k1, k2, k3 = jax.random.split(key, 3)

    B, C, H, W = 2, 4, 16, 16
    x_ = jax.random.normal(k1, (B, C, H, W), dtype=jnp.float32)
    x_t = jax.random.normal(k2, (B, C, H, W), dtype=jnp.float32)
    g_x = jax.random.normal(k3, (B, C, H, W), dtype=jnp.float32)

    out = vector_att_block_height(x_, x_t, g_x)
    out = jax.block_until_ready(out)

    ref = _reference(x_, x_t, g_x)
    assert out.shape == (B, C, H, W)
    # Both sides now request full f32 matmul precision, so the true difference
    # is ~1e-6; the tolerance below additionally covers hardware that still
    # runs f32 MXU contractions via reduced-precision passes.
    max_err = float(jnp.max(jnp.abs(out - ref)))
    assert max_err < 2e-2, f"mismatch vs reference (max abs err = {max_err})"

    print("KERNEL_OK")
</pallas_src>

<mosaic_0001>
module attributes {stable_mosaic.version = 11 : i64} {
  func.func @_height_att_kernel(%arg0: i32, %arg1: memref<1x4x16x16xf32, #tpu.memory_space<vmem>>, %arg2: memref<1x4x16x16xf32, #tpu.memory_space<vmem>>, %arg3: memref<1x4x16x16xf32, #tpu.memory_space<vmem>>, %arg4: memref<1x4x16x16xf32, #tpu.memory_space<vmem>>) attributes {dimension_semantics = [#tpu.dimension_semantics<parallel>], iteration_bounds = array<i64: 2>, scalar_prefetch = 0 : i64, scratch_operands = 0 : i64, tpu.core_type = #tpu.core_type<tc>, window_params = [{transform_indices = @transform_0, window_bounds = array<i64: 1, 4, 16, 16>}, {transform_indices = @transform_1, window_bounds = array<i64: 1, 4, 16, 16>}, {transform_indices = @transform_2, window_bounds = array<i64: 1, 4, 16, 16>}, {transform_indices = @transform_3, window_bounds = array<i64: 1, 4, 16, 16>}]} {
    %c0 = arith.constant 0 : index
    %c0_0 = arith.constant 0 : index
    %c0_1 = arith.constant 0 : index
    %c0_2 = arith.constant 0 : index
    %0 = vector.load %arg1[%c0, %c0_0, %c0_1, %c0_2] : memref<1x4x16x16xf32, #tpu.memory_space<vmem>>, vector<1x4x16x16xf32>
    %1 = vector.shape_cast %0 : vector<1x4x16x16xf32> to vector<4x16x16xf32>
    %c0_3 = arith.constant 0 : index
    %c0_4 = arith.constant 0 : index
    %c0_5 = arith.constant 0 : index
    %c0_6 = arith.constant 0 : index
    %2 = vector.load %arg2[%c0_3, %c0_4, %c0_5, %c0_6] : memref<1x4x16x16xf32, #tpu.memory_space<vmem>>, vector<1x4x16x16xf32>
    %3 = vector.shape_cast %2 : vector<1x4x16x16xf32> to vector<4x16x16xf32>
    %cst = arith.constant dense<0.000000e+00> : vector<4x16x16xf32>
    %4 = tpu.matmul %1, %3, %cst {dimension_numbers = #tpu.dot_dimension_numbers<[2], [2], [1], [1], [0, 0, 0, 1, 1, 1], [0], [0]>, precision = #tpu.contract_precision<fp32>} : vector<4x16x16xf32>, vector<4x16x16xf32>, vector<4x16x16xf32> -> vector<4x16x16xf32>
    %5 = vector.shape_cast %4 : vector<4x16x16xf32> to vector<1x4x16x16xf32>
    %cst_7 = arith.constant dense<0.000000e+00> : vector<1x16x16xf32>
    %6 = vector.multi_reduction <add>, %5, %cst_7 [1] : vector<1x4x16x16xf32> to vector<1x16x16xf32>
    %cst_8 = arith.constant dense<0xFF800000> : vector<1x16xf32>
    %7 = vector.multi_reduction <maximumf>, %6, %cst_8 [2] : vector<1x16x16xf32> to vector<1x16xf32>
    %8 = vector.shape_cast %7 : vector<1x16xf32> to vector<1x16x1xf32>
    %9 = vector.broadcast %8 : vector<1x16x1xf32> to vector<1x16x16xf32>
    %10 = arith.subf %6, %9 : vector<1x16x16xf32>
    %11 = math.exp %10 : vector<1x16x16xf32>
    %cst_9 = arith.constant dense<0.000000e+00> : vector<1x16xf32>
    %12 = vector.multi_reduction <add>, %11, %cst_9 [2] : vector<1x16x16xf32> to vector<1x16xf32>
    %13 = vector.shape_cast %12 : vector<1x16xf32> to vector<1x16x1xf32>
    %14 = vector.broadcast %13 : vector<1x16x1xf32> to vector<1x16x16xf32>
    %15 = arith.divf %11, %14 : vector<1x16x16xf32>
    %16 = vector.shape_cast %15 : vector<1x16x16xf32> to vector<1x1x16x16xf32>
    %17 = vector.shape_cast %16 : vector<1x1x16x16xf32> to vector<1x1x16x16xf32>
    %18 = vector.broadcast %17 : vector<1x1x16x16xf32> to vector<1x4x16x16xf32>
    %19 = vector.shape_cast %18 : vector<1x4x16x16xf32> to vector<4x16x16xf32>
    %c0_10 = arith.constant 0 : index
    %c0_11 = arith.constant 0 : index
    %c0_12 = arith.constant 0 : index
    %c0_13 = arith.constant 0 : index
    %20 = vector.load %arg3[%c0_10, %c0_11, %c0_12, %c0_13] : memref<1x4x16x16xf32, #tpu.memory_space<vmem>>, vector<1x4x16x16xf32>
    %21 = vector.shape_cast %20 : vector<1x4x16x16xf32> to vector<4x16x16xf32>
    %cst_14 = arith.constant dense<0.000000e+00> : vector<4x16x16xf32>
    %22 = tpu.matmul %19, %21, %cst_14 {dimension_numbers = #tpu.dot_dimension_numbers<[2], [1], [1], [2], [0, 0, 0, 1, 1, 2], [0], [0]>, precision = #tpu.contract_precision<fp32>} : vector<4x16x16xf32>, vector<4x16x16xf32>, vector<4x16x16xf32> -> vector<4x16x16xf32>
    %23 = vector.shape_cast %22 : vector<4x16x16xf32> to vector<1x4x16x16xf32>
    %c0_15 = arith.constant 0 : index
    %c0_16 = arith.constant 0 : index
    %c0_17 = arith.constant 0 : index
    %c0_18 = arith.constant 0 : index
    %24 = vector.load %arg4[%c0_15, %c0_16, %c0_17, %c0_18] : memref<1x4x16x16xf32, #tpu.memory_space<vmem>>, vector<1x4x16x16xf32>
    tpu.vector_store %arg4[%c0_15, %c0_16, %c0_17, %c0_18], %23 {strides = array<i32>} : memref<1x4x16x16xf32, #tpu.memory_space<vmem>>, vector<1x4x16x16xf32>,
    return
  }
  func.func @transform_0(%arg0: i32) -> (i32, i32, i32, i32) {
    %c0_i32 = arith.constant 0 : i32
    %c0_i32_0 = arith.constant 0 : i32
    %c0_i32_1 = arith.constant 0 : i32
    %c0_i32_2 = arith.constant 0 : i32
    return %arg0, %c0_i32, %c0_i32_0, %c0_i32_1 : i32, i32, i32, i32
  }
  func.func @transform_1(%arg0: i32) -> (i32, i32, i32, i32) {
    %c0_i32 = arith.constant 0 : i32
    %c0_i32_0 = arith.constant 0 : i32
    %c0_i32_1 = arith.constant 0 : i32
    %c0_i32_2 = arith.constant 0 : i32
    return %arg0, %c0_i32, %c0_i32_0, %c0_i32_1 : i32, i32, i32, i32
  }
  func.func @transform_2(%arg0: i32) -> (i32, i32, i32, i32) {
    %c0_i32 = arith.constant 0 : i32
    %c0_i32_0 = arith.constant 0 : i32
    %c0_i32_1 = arith.constant 0 : i32
    %c0_i32_2 = arith.constant 0 : i32
    return %arg0, %c0_i32, %c0_i32_0, %c0_i32_1 : i32, i32, i32, i32
  }
  func.func @transform_3(%arg0: i32) -> (i32, i32, i32, i32) {
    %c0_i32 = arith.constant 0 : i32
    %c0_i32_0 = arith.constant 0 : i32
    %c0_i32_1 = arith.constant 0 : i32
    %c0_i32_2 = arith.constant 0 : i32
    return %arg0, %c0_i32, %c0_i32_0, %c0_i32_1 : i32, i32, i32, i32
  }
}

</mosaic_0001>

<bundles_post_ra>
// kernel: tpu_custom_call.1
= control target key start
LH: loop header
LB: loop body
LE: loop exit
PB: predicated region body
PF: predicated region fallthrough
CT: control target
= control target key end

     0   :  { %s6047_s0 = inlined_call_operand.hbm [shape: f32[2,4,16,16], index: 0, kind: input, shape index: {}]   ;;  %s6048_s1 = inlined_call_operand.hbm [shape: f32[2,4,16,16], index: 1, kind: input, shape index: {}]   ;;  %s6049_s2 = inlined_call_operand.hbm [shape: f32[2,4,16,16], index: 2, kind: input, shape index: {}]   ;;  %s6050_s3 = inlined_call_operand.hbm [shape: f32[2,4,16,16], index: 3, kind: output, shape index: {}]  }
   0x1   :  { %6057 = sst [smem:[#allocation12_spill]] %s6047_s0 }
   0x2   :  { %6058 = sst [smem:[#allocation13_spill]] %s6048_s1 }
   0x3   :  { %8 = vsyncpa [#allocation3], 0 }
   0x4   :  { %10 = vsyncpa [#allocation3 + $0x1], 0 }
   0x5   :  { %11 = vsyncpa [#allocation6], 0 }
   0x6   :  { %13 = vsyncpa [#allocation6 + $0x1], 0 }
   0x7   :  { %14 = vsyncpa [#allocation4], 0 }
   0x8   :  { %16 = vsyncpa [#allocation4 + $0x1], 0  ;;  %s5339_s12 = smov 0   ;;  %s5341_s13 = smov 0  }
   0x9   :  { %s5343_s14 = smov 0   ;;  %s5345_s15 = smov 0  }
   0xa LB: > { %s5360_s16 = sadd.s32 4294967295, %s5309_s15   ;;  %s4535_s17 = sadd.s32 4294967294, %s5309_s15   ;;  %s5309_s15 = sphi %s5345_s15, %s6078_s15   ;;  %s5305_s14 = sphi %s5343_s14, %s6077_s14   ;;  %s5301_s13 = sphi %s5341_s13, %s6076_s13   ;;  %s5297_s12 = sphi %s5339_s12, %s6075_s12  }
   0xb   : > { %s5364_s18 = sadd.s32 1, %s5309_s15   ;;  %s29_s19 = sadd.s32 1, %s5305_s14 }
   0xc   : > { %s26_s20 = ssub.s32 %s5309_s15, %s5364_s18  ;;  %p36_p0 = scmp.ne.s32.totalorder %s5305_s14, %s5301_s13 }
   0xd   : > { %p27_p1 = scmp.eq.s32.totalorder %s26_s20, 0  ;;  %p37_p2 = scmp.eq.s32.totalorder %s5309_s15, 0 }
   0xe   : > { %p42_p3 = scmp.ne.s32.totalorder %s5301_s13, %s5297_s12  ;;  %p43_p4 = scmp.eq.s32.totalorder %s5360_s16, 0 }
   0xf   : > { %s5376_s21 = scalar_select %p27_p1, %s5305_s14, %s29_s19  }
  0x10   : > { %p38_p5 = por %p37_p2, %p36_p0  ;;  %p5378_p6 = por %p43_p4, %p42_p3 }
  0x11   : > { %p118_p7 = scmp.eq.s32.totalorder %s5360_s16, 1  ;;  %p124_p8 = scmp.eq.s32.totalorder %s4535_s17, 1 }
  0x12   : > { %s6059_s22 = scalar_select %p5378_p6, 1, 0 }
  0x13   : > { %p5111_p10 = scmp.lt.s32.totalorder %s5309_s15, 2  ;;  %p5385_p11 = por %p118_p7, %p36_p0 }
  0x14   : > { %p5389_p12 = por %p124_p8, %p42_p3  ;;  %s144_s25 = sand.u32 1, %s5305_s14  }
  0x15   : > { %s6060_s23 = scalar_select %p5385_p11, 1, 0 }
  0x16   : > { %s6061_s24 = scalar_select %p5389_p12, 1, 0 }
  0x17   : > { %s5395_s26 = sshll.u32 %s5309_s15, 10  ;;  %s5399_s27 = sshll.u32 %s144_s25, 6 }
  0x18   : > { %p5401_p13 = pnand %p5111_p10, %p38_p5  ;;  %s165_s29 = sand.u32 1, %s5309_s15  }
  0x19   : > { %s6063_s1 = sld [smem:[#allocation13_spill]]  ;;  %s169_s6 = scalar_lea.vmem [#allocation5], %s5399_s27 }
  0x1a   : > { %s176_s7 = sshll.u32 %s169_s6, 4  ;;  %s5416_s8 = scalar_lea.sflag [#allocation6], %s165_s29  ;;  %s5413_s7 = int_to_ptr.vmem [resolvable:$true] %s176_s7 }
  0x1b   : > { %p5422_p2 = pneg %p5401_p13 }
  0x1f   : > { %s5410_s5 = scalar_lea.hbm %s6063_s1, %s5395_s26  ;;  %s5162_s19 = scalar_lea.hbm %s6063_s1, 2048 }
  0x20   : > { %s5157_s9 = scalar_lea.hbm %s5410_s5, 1024  ;;  %p5163_p5 = scmp.lt.s32.totalorder %s5410_s5, %s6063_s1 }
  0x21   : > { %p5158_p1 = scmp.ne.s32.totalorder %s5410_s5, %s5157_s9  ;;  %p5164_p7 = scmp.lt.s32.totalorder %s5162_s19, %s5157_s9 }
  0x23   : > { %p5160_p3 = pnand %p5422_p2, %p5158_p1  ;;  %p5165_p8 = por %p5164_p7, %p5163_p5 }
  0x25   : > { %p5161_p4 = pneg %p5160_p3 }
  0x27   : > { %p5166_p10 = pnand %p5165_p8, %p5161_p4 }
  0x29   : > { %5169 = shalt.err (!%p5166_p10)
}
  0x2a   : > { %s5170_s29 = scalar_lea.vmem %s5413_s7, 1024  ;;  %s5311_s4 = smov [#allocation5]  }
  0x2b   : > { %p5171_p9 = scmp.ne.s32.totalorder %s5413_s7, %s5170_s29  ;;  %s5175_s6 = sshll.u32 %s5311_s4, 4  ;;  %s5176_s6 = int_to_ptr.vmem [resolvable:$false] %s5175_s6 }
  0x2c   : > { %s5177_s11 = scalar_lea.vmem %s5176_s6, 2048  ;;  %p5178_p0 = scmp.lt.s32.totalorder %s5413_s7, %s5176_s6 }
  0x2d   : > { %p5173_p1 = pnand %p5171_p9, %p5422_p2  ;;  %p5179_p12 = scmp.lt.s32.totalorder %s5177_s11, %s5170_s29 }
  0x2f   : > { %p5174_p3 = pneg %p5173_p1  ;;  %p5180_p11 = por %p5179_p12, %p5178_p0 }
  0x31   : > { %p5181_p6 = pnand %p5180_p11, %p5174_p3 }
  0x33   : > { %5184 = shalt.err (!%p5181_p6)
}
  0x34   : > { %s6053_s9 = smov 128   ;;  %s6055_s17 = smov 8  }
  0x35   : > { %5103 = dma.hbm_to_vmem [thread:$0]  (!%p5401_p13), %s5410_s5, 1024, %s5413_s7, %s5416_s8, %s6053_s9, %s6053_s9, %s6055_s17  }
  0x36   : > { %p205_p9 = scmp.lt.s32.totalorder %s5309_s15, 3  ;;  %s6065_s0 = sld [smem:[#allocation12_spill]] }
  0x37   : > { %p6066_p6 = scmp.ge.s32.totalorder %s5309_s15, 1  ;;  %s148_s4 = scalar_lea.vmem [#allocation2], %s5399_s27 }
  0x38   : > { %s155_s6 = sshll.u32 %s148_s4, 4  ;;  %s145_s5 = scalar_lea.sflag [#allocation3], %s144_s25  ;;  %s5462_s6 = int_to_ptr.vmem [resolvable:$true] %s155_s6 }
  0x39   : > { %p5457_p11 = pnand %p6066_p6, %p205_p9 }
  0x3b   : > { %s6067_s29 = scalar_select %p5457_p11, 1, 0 }
  0x3c   : > { %s5453_s30 = scalar_lea.hbm %s6065_s0, %s5395_s26  ;;  %s5190_s20 = scalar_lea.hbm %s6065_s0, 2048 }
  0x3d   : > { %s5185_s7 = scalar_lea.hbm %s5453_s30, 1024  ;;  %p5191_p5 = scmp.lt.s32.totalorder %s5453_s30, %s6065_s0 }
  0x3e   : > { %p5186_p12 = scmp.ne.s32.totalorder %s5453_s30, %s5185_s7  ;;  %p5192_p7 = scmp.lt.s32.totalorder %s5190_s20, %s5185_s7 }
  0x40   : > { %p5188_p0 = pnand %p5186_p12, %p5422_p2  ;;  %p5193_p8 = por %p5192_p7, %p5191_p5 }
  0x42   : > { %p5189_p4 = pneg %p5188_p0 }
  0x44   : > { %p5194_p10 = pnand %p5193_p8, %p5189_p4 }
  0x46   : > { %5197 = shalt.err (!%p5194_p10)
}
  0x47   : > { %s5198_s25 = scalar_lea.vmem %s5462_s6, 1024  ;;  %s5314_s4 = smov [#allocation2]  }
  0x48   : > { %p5199_p1 = scmp.ne.s32.totalorder %s5462_s6, %s5198_s25  ;;  %s5203_s11 = sshll.u32 %s5314_s4, 4  ;;  %s5204_s11 = int_to_ptr.vmem [resolvable:$false] %s5203_s11 }
  0x49   : > { %s5205_s19 = scalar_lea.vmem %s5204_s11, 2048  ;;  %p5206_p6 = scmp.lt.s32.totalorder %s5462_s6, %s5204_s11 }
  0x4a   : > { %p5201_p3 = pnand %p5199_p1, %p5422_p2  ;;  %p5207_p12 = scmp.lt.s32.totalorder %s5205_s19, %s5198_s25 }
  0x4c   : > { %p5202_p9 = pneg %p5201_p3  ;;  %p5208_p0 = por %p5207_p12, %p5206_p6 }
  0x4e   : > { %p5209_p11 = pnand %p5208_p0, %p5202_p9 }
  0x50   : > { %5212 = shalt.err (!%p5209_p11)
}
  0x51   : > { %s6068_s9 = smov 8   ;;  %s6069_s17 = smov 128  }
  0x52   : > { %5100 = dma.hbm_to_vmem [thread:$0]  (!%p5401_p13), %s5453_s30, 1024, %s5462_s6, %s145_s5, %s6069_s17, %s6069_s17, %s6068_s9  }
  0x53   : > { %s5493_s4 = scalar_lea.hbm %s6049_s2, %s5395_s26  ;;  %s190_s25 = scalar_lea.vmem [#allocation7], %s5399_s27 }
  0x54   : > { %s197_s11 = sshll.u32 %s190_s25, 4  ;;  %s5213_s19 = scalar_lea.hbm %s5493_s4, 1024  ;;  %s198_s11 = int_to_ptr.vmem [resolvable:$true] %s197_s11 }
  0x55   : > { %p5214_p11 = scmp.ne.s32.totalorder %s5493_s4, %s5213_s19  ;;  %s5218_s30 = scalar_lea.hbm %s6049_s2, 2048 }
  0x56   : > { %p5219_p7 = scmp.lt.s32.totalorder %s5493_s4, %s6049_s2  ;;  %p5220_p8 = scmp.lt.s32.totalorder %s5218_s30, %s5213_s19 }
  0x57   : > { %p5216_p4 = pnand %p5214_p11, %p5422_p2 }
  0x58   : > { %p5221_p10 = por %p5220_p8, %p5219_p7 }
  0x59   : > { %p5217_p5 = pneg %p5216_p4 }
  0x5b   : > { %p5222_p1 = pnand %p5221_p10, %p5217_p5 }
  0x5d   : > { %5225 = shalt.err (!%p5222_p1)
}
  0x5e   : > { %s5226_s26 = scalar_lea.vmem %s198_s11, 1024  ;;  %s5315_s27 = smov [#allocation7]  }
  0x5f   : > { %p5227_p3 = scmp.ne.s32.totalorder %s198_s11, %s5226_s26  ;;  %s5231_s7 = sshll.u32 %s5315_s27, 4  ;;  %s5232_s7 = int_to_ptr.vmem [resolvable:$false] %s5231_s7 }
  0x60   : > { %s5233_s20 = scalar_lea.vmem %s5232_s7, 2048  ;;  %p5234_p12 = scmp.lt.s32.totalorder %s198_s11, %s5232_s7 }
  0x61   : > { %p5229_p9 = pnand %p5227_p3, %p5422_p2  ;;  %p5235_p0 = scmp.lt.s32.totalorder %s5233_s20, %s5226_s26 }
  0x63   : > { %p5230_p6 = pneg %p5229_p9  ;;  %p5236_p11 = por %p5235_p0, %p5234_p12 }
  0x65   : > { %p5237_p4 = pnand %p5236_p11, %p5230_p6 }
  0x67   : > { %5240 = shalt.err (!%p5237_p4)
}
  0x68   : > { %5106 = dma.hbm_to_vmem [thread:$0]  (!%p5401_p13), %s5493_s4, 1024, %s198_s11, %s5416_s8, %s6069_s17, %s6069_s17, %s6068_s9  }
  0x69   : > { %p6070_p2 = scmp.ne.s32.totalorder %s6067_s29, 0 }
  0x6a   : > { %s5519_s0 = sand.u32 (!%p6070_p2), 1, %s5301_s13   ;;  %p6071_p5 = scmp.ne.s32.totalorder (!%p6070_p2), %s6059_s22, 0 }
  0x6b   : > { %209 = sbr.rel (%p6070_p2) target bundleno = 1026 (0x402), region = 32  ;;  %s5522_s1 = sshll.u32 (!%p6070_p2), %s5519_s0, 6 }
  0x6c   : > { %s212_s10 = scalar_lea.sflag (!%p6070_p2), [#allocation3], %s5519_s0  ;;  %s5526_s28 = scalar_lea.vmem (!%p6070_p2), [#allocation2], %s5522_s1 }
  0x70   : > { %5284 = dma.done.wait (%p6071_p5), %s212_s10, 1024  }
  0x71   : > { %5286 = vsyncadd (%p6071_p5), %s212_s10, 4294966272  ;;  %s220_s8 = sand.u32 1, %s5360_s16   ;;  %s5534_s9 = scalar_lea.vmem [#allocation5], %s5522_s1 }
  0x72   : > { %s221_s29 = scalar_lea.sflag [#allocation6], %s220_s8 }
  0x73   : > { %5288 = dma.done.wait (%p6071_p5), %s221_s29, 2048  }
  0x74   : > { %5290 = vsyncadd (%p6071_p5), %s221_s29, 4294965248  ;;  %vm282_vm0 = vcmask 130048   ;;  %v275_v0 = vld [vmem:[%s5534_s9 + $0x8] sm:$0xff]  ;;  %v274_v1 = vld [vmem:[%s5534_s9] sm:$0xff]  ;;  %s5752_s22 = scalar_lea.vmem [#allocation7], %s5522_s1  ;;  %s5979_s17 = scalar_lea.vmem [#allocation8], %s5522_s1 }
  0x75   : > { %v266_v2 = vld [vmem:[%s5526_s28] sm:$0xff]  ;;  %v293_v3 = vsel %vm282_vm0, %v275_v0, 0  ;;  %v290_v4 = vsel %vm282_vm0, %v274_v1, 0  ;;  %v267_v6 = vld [vmem:[%s5526_s28 + $0x8] sm:$0xff]  ;;  %v268_v19 = vld [vmem:[%s5526_s28 + $0x10] sm:$0xff]  ;;  %s4560_s4 = sshll.u32 %s5360_s16, 10 }
  0x76   : > { %v284_v5 = vsel %vm282_vm0, %v266_v2, 0  ;;  %v5547_v7 = vand.u32 4294901760, %v293_v3  ;;  %v5549_v8 = vand.u32 4294901760, %v290_v4  ;;  %v287_v10 = vsel %vm282_vm0, %v267_v6, 0  ;;  %v277_v24 = vld [vmem:[%s5534_s9 + $0x18] sm:$0xff]  ;;  %v276_v33 = vld [vmem:[%s5534_s9 + $0x10] sm:$0xff]  ;;  %s5998_s30 = scalar_lea.hbm %s6050_s3, %s4560_s4 }
  0x77   : > { %v5551_v9 = vand.u32 4294901760, %v284_v5  ;;  %v5554_v11 = vand.u32 4294901760, %v287_v10  ;;  %v798_v26 = vsel %vm282_vm0, %v268_v19, 0  ;;  %v807_v31 = vsel %vm282_vm0, %v277_v24, 0  ;;  %v269_v32 = vld [vmem:[%s5526_s28 + $0x18] sm:$0xff]  ;;  %v270_v54 = vld [vmem:[%s5526_s28 + $0x20] sm:$0xff] }
  0x78   : > { %4753 = vmatprep.subr.mxu0 %v5547_v7  ;;  %v412_v12 = vsub.f32 %v293_v3, %v5547_v7  ;;  %v419_v14 = vsub.f32 %v290_v4, %v5549_v8  ;;  %v5571_v34 = vand.u32 4294901760, %v798_v26  ;;  %v5573_v35 = vand.u32 4294901760, %v807_v31  ;;  %v279_v55 = vld [vmem:[%s5534_s9 + $0x28] sm:$0xff]  ;;  %v278_v61 = vld [vmem:[%s5534_s9 + $0x20] sm:$0xff]  ;;  %v281_v19 = vld [vmem:[%s5534_s9 + $0x38] sm:$0xff]  ;;  %s4419_s25 = sshll.u32 %s5979_s17, 4  ;;  %s6000_s25 = int_to_ptr.vmem [resolvable:$true] %s4419_s25 }
  0x79   : > { %v363_v13 = vsub.f32 %v284_v5, %v5551_v9  ;;  %4764 = vmatprep.mubr.f32.mxu1 %v5551_v9  ;;  %4754 = vmatpush3.xpose.msra.mxu0 %v5547_v7  ;;  %v373_v15 = vsub.f32 %v287_v10, %v5554_v11  ;;  %v801_v36 = vsel %vm282_vm0, %v269_v32, 0  ;;  %v804_v37 = vsel %vm282_vm0, %v276_v33, 0  ;;  %v271_v60 = vld [vmem:[%s5526_s28 + $0x28] sm:$0xff]  ;;  %v273_v24 = vld [vmem:[%s5526_s28 + $0x38] sm:$0xff]  ;;  %s4406_s16 = scalar_lea.sflag [#allocation4], %s5519_s0  ;;  %s5241_s6 = scalar_lea.vmem %s6000_s25, 1024 }
  0x7a   : > { %4755 = vmatprep.subr.mxu0 %v5549_v8  ;;  %v413_v16 = vand.u32 4294901760, %v412_v12  ;;  %v420_v18 = vand.u32 4294901760, %v419_v14  ;;  %v5578_v38 = vsub.f32 %v798_v26, %v5571_v34  ;;  %v5580_v39 = vand.u32 4294901760, %v801_v36  ;;  %p5242_p13 = scmp.ne.s32.totalorder %s6000_s25, %s5241_s6  ;;  %p6072_p7 = scmp.ne.s32.totalorder %s6060_s23, 0 }
  0x7b   : > { %v364_v17 = vand.u32 4294901760, %v363_v13  ;;  %v374_v20 = vand.u32 4294901760, %v373_v15  ;;  %v5583_v40 = vand.u32 4294901760, %v804_v37  ;;  %v926_v41 = vsub.f32 %v807_v31, %v5573_v35  ;;  %s5316_s5 = smov [#allocation8]  }
  0x7c   : > { %v414_v21 = vsub.f32 %v412_v12, %v413_v16  ;;  %v421_v23 = vsub.f32 %v419_v14, %v420_v18  ;;  %v878_v42 = vand.u32 4294901760, %v5578_v38  ;;  %v5590_v43 = vsub.f32 %v801_v36, %v5580_v39  ;;  %p5243_p8 = pnand %p5242_p13, %p6072_p7  ;;  %s5245_s26 = sshll.u32 %s5316_s5, 4  ;;  %s5246_s26 = int_to_ptr.vmem [resolvable:$false] %s5245_s26 }
  0x7d   : > { %v365_v22 = vsub.f32 %v363_v13, %v364_v17  ;;  %4756 = vmatpush3.xpose.msra.mxu0 %v5549_v8  ;;  %v375_v25 = vsub.f32 %v373_v15, %v374_v20  ;;  %v927_v44 = vand.u32 4294901760, %v926_v41  ;;  %v933_v45 = vsub.f32 %v804_v37, %v5583_v40  ;;  %s5247_s27 = scalar_lea.vmem %s5246_s26, 2048  ;;  %p5248_p1 = scmp.lt.s32.totalorder %s6000_s25, %s5246_s26 }
  0x7e   : > { %v415_v27 = vand.u32 4294901760, %v414_v21  ;;  %4767 = vmatprep.subr.mxu0 %v412_v12  ;;  %v422_v29 = vand.u32 4294901760, %v421_v23  ;;  %v879_v46 = vsub.f32 %v5578_v38, %v878_v42  ;;  %v888_v47 = vand.u32 4294901760, %v5590_v43  ;;  %p5244_p10 = pneg %p5243_p8  ;;  %p5249_p3 = scmp.lt.s32.totalorder %s5247_s27, %s5241_s6 }
  0x7f   : > { %v366_v28 = vand.u32 4294901760, %v365_v22  ;;  %v376_v30 = vand.u32 4294901760, %v375_v25  ;;  %v928_v48 = vsub.f32 %v926_v41, %v927_v44  ;;  %v934_v49 = vand.u32 4294901760, %v933_v45  ;;  %v280_v25 = vld [vmem:[%s5534_s9 + $0x30] sm:$0xff] }
  0x80   : > { %4760 = vmatprep.subr.mxu1 %v415_v27  ;;  %v880_v50 = vand.u32 4294901760, %v879_v46  ;;  %v889_v51 = vsub.f32 %v5590_v43, %v888_v47  ;;  %v1312_v57 = vsel %vm282_vm0, %v270_v54, 0  ;;  %v1321_v59 = vsel %vm282_vm0, %v279_v55, 0  ;;  %p5250_p9 = por %p5249_p3, %p5248_p1 }
  0x81   : > { %4757 = vmatprep.mubr.f32.mxu0 %v366_v28  ;;  %4761 = vmatpush3.xpose.msra.mxu1 %v415_v27  ;;  %v929_v52 = vand.u32 4294901760, %v928_v48  ;;  %v935_v53 = vsub.f32 %v933_v45, %v934_v49  ;;  %v5620_v62 = vand.u32 4294901760, %v1312_v57  ;;  %v5622_v63 = vand.u32 4294901760, %v1321_v59 }
  0x82   : > { %4758 = vmatmul.mubr.f32.vlgmr.msra.gmra.mxu0 %v376_v30  ;;  %4762 = vmatprep.subr.mxu1 %v422_v29  ;;  %v890_v56 = vand.u32 4294901760, %v889_v51  ;;  %v1315_v0 = vsel %vm282_vm0, %v271_v60, 0  ;;  %v1318_v1 = vsel %vm282_vm0, %v278_v61, 0  ;;  %v1835_v23 = vsel %vm282_vm0, %v281_v19, 0  ;;  %p5251_p6 = pnand %p5250_p9, %p5244_p10 }
  0x83   : > { %4768 = vmatpush3.xpose.msra.mxu0 %v412_v12  ;;  %4771 = vmatprep.mubr.f32.mxu0 %v363_v13  ;;  %v936_v58 = vand.u32 4294901760, %v935_v53  ;;  %v5629_v2 = vsub.f32 %v1312_v57, %v5620_v62  ;;  %v5631_v3 = vand.u32 4294901760, %v1315_v0  ;;  %v5634_v4 = vand.u32 4294901760, %v1318_v1 }
  0x84   : > { %4769 = vmatprep.subr.mxu0 %v419_v14  ;;  %v1440_v5 = vsub.f32 %v1321_v59, %v5622_v63  ;;  %v5678_v27 = vand.u32 4294901760, %v1835_v23  ;;  %v1829_v28 = vsel %vm282_vm0, %v273_v24, 0 }
  0x85   : > { %4763 = vmatpush3.xpose.msra.mxu1 %v422_v29  ;;  %v1392_v6 = vand.u32 4294901760, %v5629_v2  ;;  %v1832_v29 = vsel %vm282_vm0, %v280_v25, 0  ;;  %v5687_v31 = vand.u32 4294901760, %v1829_v28 }
  0x86   : > { %4774 = vmatprep.subr.mxu1 %v5547_v7  ;;  %v5690_v32 = vand.u32 4294901760, %v1832_v29  ;;  %v1954_v33 = vsub.f32 %v1835_v23, %v5678_v27 }
  0x87   : > { %4770 = vmatpush3.xpose.msra.mxu0 %v419_v14  ;;  %v1393_v10 = vsub.f32 %v5629_v2, %v1392_v6 }
  0x88   : > { %4781 = vmatprep.subr.mxu0 %v413_v16  ;;  %4765 = vmatmul.mubr.f32.vlgmr.msra.gmra.mxu1 %v5554_v11  ;;  %v1955_v36 = vand.u32 4294901760, %v1954_v33  ;;  %v1961_v37 = vsub.f32 %v1832_v29, %v5690_v32 }
  0x89   : > { %4775 = vmatpush3.xpose.msra.mxu1 %v5547_v7  ;;  %4778 = vmatprep.mubr.f32.mxu1 %v364_v17  ;;  %v1394_v14 = vand.u32 4294901760, %v1393_v10 }
  0x8a   : > { %4772 = vmatmul.mubr.f32.vlgmr.msra.gmra.mxu0 %v373_v15  ;;  %4776 = vmatprep.subr.mxu1 %v5549_v8 }
  0x8b   : > { %4782 = vmatpush3.xpose.msra.mxu0 %v413_v16  ;;  %4785 = vmatprep.mubr.f32.mxu0 %v5551_v9 }
  0x8c   : > { %4783 = vmatprep.subr.mxu0 %v420_v18 }
  0x8d   : > { %4777 = vmatpush3.xpose.msra.mxu1 %v5549_v8 }
  0x8e   : > { %4788 = vmatprep.subr.mxu1 %v5547_v7 }
  0x8f   : > { %4784 = vmatpush3.xpose.msra.mxu0 %v420_v18  ;;  %v272_v18 = vld [vmem:[%s5526_s28 + $0x30] sm:$0xff] }
  0x90   : > { %4795 = vmatprep.subr.mxu0 %v5573_v35  ;;  %4779 = vmatmul.mubr.f32.vlgmr.msra.gmra.mxu1 %v374_v20  ;;  %v1826_v21 = vsel %vm282_vm0, %v272_v18, 0 }
  0x91   : > { %4789 = vmatpush3.xpose.msra.mxu1 %v5547_v7  ;;  %4792 = vmatprep.mubr.f32.mxu1 %v5551_v9  ;;  %v5642_v7 = vsub.f32 %v1315_v0, %v5631_v3  ;;  %v1447_v9 = vsub.f32 %v1318_v1, %v5634_v4  ;;  %v5676_v26 = vand.u32 4294901760, %v1826_v21 }
  0x92   : > { %4786 = vmatmul.mubr.f32.vlgmr.msra.gmra.mxu0 %v5554_v11  ;;  %4790 = vmatprep.subr.mxu1 %v5549_v8 }
  0x93   : > { %4796 = vmatpush3.xpose.msra.mxu0 %v5573_v35  ;;  %4799 = vmatprep.mubr.f32.mxu0 %v880_v50  ;;  %v1448_v13 = vand.u32 4294901760, %v1447_v9  ;;  %v5685_v30 = vsub.f32 %v1826_v21, %v5676_v26 }
  0x94   : > { %4797 = vmatprep.subr.mxu0 %v5583_v40 }
  0x95   : > { %4791 = vmatpush3.xpose.msra.mxu1 %v5549_v8  ;;  %v1441_v8 = vand.u32 4294901760, %v1440_v5  ;;  %v1449_v17 = vsub.f32 %v1447_v9, %v1448_v13 }
  0x96   : > { %4802 = vmatprep.subr.mxu1 %v929_v52 }
  0x97   : > { %4798 = vmatpush3.xpose.msra.mxu0 %v5583_v40  ;;  %v1442_v12 = vsub.f32 %v1440_v5, %v1441_v8  ;;  %v1450_v22 = vand.u32 4294901760, %v1449_v17 }
  0x98   : > { %4809 = vmatprep.subr.mxu0 %v926_v41  ;;  %4793 = vmatmul.mubr.f32.vlgmr.msra.gmra.mxu1 %v5554_v11  ;;  %v1402_v11 = vand.u32 4294901760, %v5642_v7 }
  0x99   : > { %4803 = vmatpush3.xpose.msra.mxu1 %v929_v52  ;;  %4806 = vmatprep.mubr.f32.mxu1 %v5571_v34  ;;  %v1443_v16 = vand.u32 4294901760, %v1442_v12 }
  0x9a   : > { %4800 = vmatmul.mubr.f32.vlgmr.msra.gmra.mxu0 %v890_v56  ;;  %4804 = vmatprep.subr.mxu1 %v936_v58  ;;  %v1403_v15 = vsub.f32 %v5642_v7, %v1402_v11 }
  0x9b   : > { %4810 = vmatpush3.xpose.msra.mxu0 %v926_v41  ;;  %4813 = vmatprep.mubr.f32.mxu0 %v5578_v38  ;;  %v1962_v41 = vand.u32 4294901760, %v1961_v37 }
  0x9c   : > { %4811 = vmatprep.subr.mxu0 %v933_v45  ;;  %v1404_v20 = vand.u32 4294901760, %v1403_v15 }
  0x9d   : > { %4805 = vmatpush3.xpose.msra.mxu1 %v936_v58 }
  0x9e   : > { %4816 = vmatprep.subr.mxu1 %v5573_v35 }
  0x9f   : > { %4812 = vmatpush3.xpose.msra.mxu0 %v933_v45  ;;  %v1963_v45 = vsub.f32 %v1961_v37, %v1962_v41 }
  0xa0   : > { %4823 = vmatprep.subr.mxu0 %v927_v44  ;;  %4807 = vmatmul.mubr.f32.vlgmr.msra.gmra.mxu1 %v5580_v39 }
  0xa1   : > { %4817 = vmatpush3.xpose.msra.mxu1 %v5573_v35  ;;  %4820 = vmatprep.mubr.f32.mxu1 %v878_v42 }
  0xa2   : > { %4814 = vmatmul.mubr.f32.vlgmr.msra.gmra.mxu0 %v5590_v43  ;;  %4818 = vmatprep.subr.mxu1 %v5583_v40 }
  0xa3   : > { %4824 = vmatpush3.xpose.msra.mxu0 %v927_v44  ;;  %4827 = vmatprep.mubr.f32.mxu0 %v5571_v34 }
  0xa4   : > { %4825 = vmatprep.subr.mxu0 %v934_v49 }
  0xa5   : > { %4819 = vmatpush3.xpose.msra.mxu1 %v5583_v40 }
  0xa6   : > { %4830 = vmatprep.subr.mxu1 %v5573_v35 }
  0xa7   : > { %4826 = vmatpush3.xpose.msra.mxu0 %v934_v49 }
  0xa8   : > { %4837 = vmatprep.subr.mxu0 %v5622_v63  ;;  %4821 = vmatmul.mubr.f32.vlgmr.msra.gmra.mxu1 %v888_v47  ;;  %v1964_v47 = vand.u32 4294901760, %v1963_v45 }
  0xa9   : > { %4831 = vmatpush3.xpose.msra.mxu1 %v5573_v35  ;;  %4834 = vmatprep.mubr.f32.mxu1 %v5571_v34  ;;  %v1906_v34 = vand.u32 4294901760, %v5685_v30  ;;  %v1915_v35 = vsub.f32 %v1829_v28, %v5687_v31 }
  0xaa   : > { %4828 = vmatmul.mubr.f32.vlgmr.msra.gmra.mxu0 %v5580_v39  ;;  %4832 = vmatprep.subr.mxu1 %v5583_v40 }
  0xab   : > { %4838 = vmatpush3.xpose.msra.mxu0 %v5622_v63  ;;  %4841 = vmatprep.mubr.f32.mxu0 %v1394_v14  ;;  %v1907_v38 = vsub.f32 %v5685_v30, %v1906_v34 }
  0xac   : > { %4839 = vmatprep.subr.mxu0 %v5634_v4 }
  0xad   : > { %4833 = vmatpush3.xpose.msra.mxu1 %v5583_v40  ;;  %v1956_v40 = vsub.f32 %v1954_v33, %v1955_v36  ;;  %v1908_v42 = vand.u32 4294901760, %v1907_v38 }
  0xae   : > { %4844 = vmatprep.subr.mxu1 %v1443_v16 }
  0xaf   : > { %4840 = vmatpush3.xpose.msra.mxu0 %v5634_v4  ;;  %v1957_v44 = vand.u32 4294901760, %v1956_v40 }
  0xb0   : > { %4851 = vmatprep.subr.mxu0 %v1440_v5  ;;  %4835 = vmatmul.mubr.f32.vlgmr.msra.gmra.mxu1 %v5580_v39  ;;  %v1916_v39 = vand.u32 4294901760, %v1915_v35 }
  0xb1   : > { %4845 = vmatpush3.xpose.msra.mxu1 %v1443_v16  ;;  %4848 = vmatprep.mubr.f32.mxu1 %v5620_v62 }
  0xb2   : > { %4842 = vmatmul.mubr.f32.vlgmr.msra.gmra.mxu0 %v1404_v20  ;;  %4846 = vmatprep.subr.mxu1 %v1450_v22  ;;  %v1917_v43 = vsub.f32 %v1915_v35, %v1916_v39 }
  0xb3   : > { %4852 = vmatpush3.xpose.msra.mxu0 %v1440_v5  ;;  %4855 = vmatprep.mubr.f32.mxu0 %v5629_v2 }
  0xb4   : > { %4853 = vmatprep.subr.mxu0 %v1447_v9  ;;  %v1918_v46 = vand.u32 4294901760, %v1917_v43 }
  0xb5   : > { %4847 = vmatpush3.xpose.msra.mxu1 %v1450_v22 }
  0xb6   : > { %4858 = vmatprep.subr.mxu1 %v5622_v63 }
  0xb7   : > { %4854 = vmatpush3.xpose.msra.mxu0 %v1447_v9 }
  0xb8   : > { %4865 = vmatprep.subr.mxu0 %v1441_v8  ;;  %4849 = vmatmul.mubr.f32.vlgmr.msra.gmra.mxu1 %v5631_v3 }
  0xb9   : > { %4859 = vmatpush3.xpose.msra.mxu1 %v5622_v63  ;;  %4862 = vmatprep.mubr.f32.mxu1 %v1392_v6 }
  0xba   : > { %4856 = vmatmul.mubr.f32.vlgmr.msra.gmra.mxu0 %v5642_v7  ;;  %4860 = vmatprep.subr.mxu1 %v5634_v4 }
  0xbb   : > { %4866 = vmatpush3.xpose.msra.mxu0 %v1441_v8  ;;  %4869 = vmatprep.mubr.f32.mxu0 %v5620_v62 }
  0xbc   : > { %4867 = vmatprep.subr.mxu0 %v1448_v13 }
  0xbd   : > { %4861 = vmatpush3.xpose.msra.mxu1 %v5634_v4 }
  0xbe   : > { %4872 = vmatprep.subr.mxu1 %v5622_v63 }
  0xbf   : > { %4868 = vmatpush3.xpose.msra.mxu0 %v1448_v13 }
  0xc0   : > { %4879 = vmatprep.subr.mxu0 %v5678_v27  ;;  %4863 = vmatmul.mubr.f32.vlgmr.msra.gmra.mxu1 %v1402_v11 }
  0xc1   : > { %4873 = vmatpush3.xpose.msra.mxu1 %v5622_v63  ;;  %4876 = vmatprep.mubr.f32.mxu1 %v5620_v62 }
  0xc2   : > { %4870 = vmatmul.mubr.f32.vlgmr.msra.gmra.mxu0 %v5631_v3  ;;  %4874 = vmatprep.subr.mxu1 %v5634_v4 }
  0xc3   : > { %4880 = vmatpush3.xpose.msra.mxu0 %v5678_v27  ;;  %4883 = vmatprep.mubr.f32.mxu0 %v1908_v42 }
  0xc4   : > { %4881 = vmatprep.subr.mxu0 %v5690_v32 }
  0xc5   : > { %4875 = vmatpush3.xpose.msra.mxu1 %v5634_v4 }
  0xc6   : > { %4886 = vmatprep.subr.mxu1 %v1957_v44 }
  0xc7   : > { %4882 = vmatpush3.xpose.msra.mxu0 %v5690_v32 }
  0xc8   : > { %4893 = vmatprep.subr.mxu0 %v1954_v33  ;;  %4877 = vmatmul.mubr.f32.vlgmr.msra.gmra.mxu1 %v5631_v3 }
  0xc9   : > { %4887 = vmatpush3.xpose.msra.mxu1 %v1957_v44  ;;  %4890 = vmatprep.mubr.f32.mxu1 %v5676_v26 }
  0xca   : > { %4884 = vmatmul.mubr.f32.vlgmr.msra.gmra.mxu0 %v1918_v46  ;;  %4888 = vmatprep.subr.mxu1 %v1964_v47 }
  0xcb   : > { %4894 = vmatpush3.xpose.msra.mxu0 %v1954_v33  ;;  %4897 = vmatprep.mubr.f32.mxu0 %v5685_v30 }
  0xcc   : > { %4895 = vmatprep.subr.mxu0 %v1961_v37 }
  0xcd   : > { %4889 = vmatpush3.xpose.msra.mxu1 %v1964_v47 }
  0xce   : > { %4900 = vmatprep.subr.mxu1 %v5678_v27 }
  0xcf   : > { %4896 = vmatpush3.xpose.msra.mxu0 %v1961_v37 }
  0xd0   : > { %4907 = vmatprep.subr.mxu0 %v1955_v36  ;;  %4891 = vmatmul.mubr.f32.vlgmr.msra.gmra.mxu1 %v5687_v31 }
  0xd1   : > { %4901 = vmatpush3.xpose.msra.mxu1 %v5678_v27  ;;  %4904 = vmatprep.mubr.f32.mxu1 %v1906_v34 }
  0xd2   : > { %4898 = vmatmul.mubr.f32.vlgmr.msra.gmra.mxu0 %v1915_v35  ;;  %4902 = vmatprep.subr.mxu1 %v5690_v32 }
  0xd3   : > { %4908 = vmatpush3.xpose.msra.mxu0 %v1955_v36  ;;  %4911 = vmatprep.mubr.f32.mxu0 %v5676_v26 }
  0xd4   : > { %4909 = vmatprep.subr.mxu0 %v1962_v41 }
  0xd5   : > { %4903 = vmatpush3.xpose.msra.mxu1 %v5690_v32 }
  0xd6   : > { %4914 = vmatprep.subr.mxu1 %v5678_v27 }
  0xd7   : > { %4910 = vmatpush3.xpose.msra.mxu0 %v1962_v41 }
  0xd8   : > { %4905 = vmatmul.mubr.f32.vlgmr.msra.gmra.mxu1 %v1916_v39 }
  0xd9   : > { %4915 = vmatpush3.xpose.msra.mxu1 %v5678_v27  ;;  %4918 = vmatprep.mubr.f32.mxu1 %v5676_v26 }
  0xda   : > { %4912 = vmatmul.mubr.f32.vlgmr.msra.gmra.mxu0 %v5687_v31  ;;  %4916 = vmatprep.subr.mxu1 %v5690_v32 }
  0xdd   : > { %4917 = vmatpush3.xpose.msra.mxu1 %v5690_v32 }
  0xe0   : > { %4919 = vmatmul.mubr.f32.vlgmr.msra.gmra.mxu1 %v5687_v31 }
 0x142   : > { %v4759_v48 = vpop.f32.mrf.mxu0 }
 0x144   : > { %v368_v49 = vpop.f32.mrf.mxu0 }
 0x148   : > { %v4766_v51 = vpop.f32.mrf.mxu1 }
 0x149   : > { %v466_v27 = vadd.f32 %v4766_v51, %v4759_v48 }
 0x14a   : > { %v4773_v50 = vpop.f32.mrf.mxu0  ;;  %v459_v53 = vpop.f32.mrf.mxu1 }
 0x14b   : > { %v460_v22 = vadd.f32 %v459_v53, %v368_v49  ;;  %v549_v37 = vadd.f32 %v4773_v50, %v466_v27 }
 0x14c   : > { %v541_v52 = vpop.f32.mrf.mxu0 }
 0x14d   : > { %v542_v30 = vadd.f32 %v541_v52, %v460_v22 }
 0x150   : > { %v4780_v55 = vpop.f32.mrf.mxu1 }
 0x151   : > { %v632_v43 = vadd.f32 %v4780_v55, %v549_v37 }
 0x152   : > { %v5733_v54 = vpop.f32.mrf.mxu0  ;;  %v623_v57 = vpop.f32.mrf.mxu1 }
 0x153   : > { %v624_v38 = vadd.f32 %v623_v57, %v542_v30  ;;  %v715_v50 = vadd.f32 %v5733_v54, %v632_v43 }
 0x154   : > { %v708_v56 = vpop.f32.mrf.mxu0 }
 0x155   : > { %v709_v49 = vadd.f32 %v708_v56, %v624_v38 }
 0x158   : > { %v5735_v59 = vpop.f32.mrf.mxu1 }
 0x15a   : > { %v4801_v58 = vpop.f32.mrf.mxu0  ;;  %v787_v61 = vpop.f32.mrf.mxu1 }
 0x15b   : > { %v788_v57 = vadd.f32 %v787_v61, %v709_v49 }
 0x15c   : > { %v882_v60 = vpop.f32.mrf.mxu0 }
 0x160   : > { %v4808_v62 = vpop.f32.mrf.mxu1 }
 0x161   : > { %v980_v23 = vadd.f32 %v4808_v62, %v4801_v58 }
 0x162   : > { %v4815_v63 = vpop.f32.mrf.mxu0  ;;  %v973_v0 = vpop.f32.mrf.mxu1 }
 0x163   : > { %v974_v21 = vadd.f32 %v973_v0, %v882_v60  ;;  %v1063_v31 = vadd.f32 %v4815_v63, %v980_v23 }
 0x164   : > { %v1055_v1 = vpop.f32.mrf.mxu0 }
 0x165   : > { %v1056_v28 = vadd.f32 %v1055_v1, %v974_v21 }
 0x168   : > { %v4822_v2 = vpop.f32.mrf.mxu1 }
 0x169   : > { %v1146_v39 = vadd.f32 %v4822_v2, %v1063_v31 }
 0x16a   : > { %v4829_v3 = vpop.f32.mrf.mxu0  ;;  %v1137_v4 = vpop.f32.mrf.mxu1 }
 0x16b   : > { %v1138_v34 = vadd.f32 %v1137_v4, %v1056_v28  ;;  %v1229_v51 = vadd.f32 %v4829_v3, %v1146_v39 }
 0x16c   : > { %v1222_v5 = vpop.f32.mrf.mxu0 }
 0x16d   : > { %v1223_v46 = vadd.f32 %v1222_v5, %v1138_v34  ;;  %v794_v5 = vadd.f32 %v5735_v59, %v715_v50  ;;  %v2376_v34 = vld [vmem:[%s5752_s22 + $0x8] sm:$0xff] }
 0x170   : > { %v4836_v6 = vpop.f32.mrf.mxu1 }
 0x171   : > { %v1308_v0 = vadd.f32 %v4836_v6, %v1229_v51 }
 0x172   : > { %v4843_v7 = vpop.f32.mrf.mxu0  ;;  %v1301_v8 = vpop.f32.mrf.mxu1 }
 0x173   : > { %v1302_v58 = vadd.f32 %v1301_v8, %v1223_v46 }
 0x174   : > { %v1396_v9 = vpop.f32.mrf.mxu0 }
 0x178   : > { %v4850_v10 = vpop.f32.mrf.mxu1 }
 0x179   : > { %v1494_v29 = vadd.f32 %v4850_v10, %v4843_v7  ;;  %v2340_v7 = vsel %vm282_vm0, %v1302_v58, 0.0  ;;  %v2347_v10 = vsel %vm282_vm0, %v1308_v0, 0.0 }
 0x17a   : > { %v4857_v11 = vpop.f32.mrf.mxu0  ;;  %v1487_v12 = vpop.f32.mrf.mxu1 }
 0x17b   : > { %v1488_v26 = vadd.f32 %v1487_v12, %v1396_v9  ;;  %v1577_v40 = vadd.f32 %v4857_v11, %v1494_v29  ;;  %v2339_v9 = vsel %vm282_vm0, %v788_v57, 0.0 }
 0x17c   : > { %v1569_v13 = vpop.f32.mrf.mxu0  ;;  %v2341_v6 = vadd.f32 %v2340_v7, %v2339_v9 }
 0x17d   : > { %v1570_v35 = vadd.f32 %v1569_v13, %v1488_v26  ;;  %v2346_v13 = vsel %vm282_vm0, %v794_v5, 0.0 }
 0x180   : > { %v4864_v14 = vpop.f32.mrf.mxu1 }
 0x181   : > { %v1660_v47 = vadd.f32 %v4864_v14, %v1577_v40 }
 0x182   : > { %v4871_v15 = vpop.f32.mrf.mxu0  ;;  %v1651_v16 = vpop.f32.mrf.mxu1 }
 0x183   : > { %v1652_v41 = vadd.f32 %v1651_v16, %v1570_v35  ;;  %v1743_v1 = vadd.f32 %v4871_v15, %v1660_v47  ;;  %v2348_v15 = vadd.f32 %v2347_v10, %v2346_v13  ;;  %v2418_v35 = vand.u32 4294901760, %v2376_v34 }
 0x184   : > { %v1736_v17 = vpop.f32.mrf.mxu0 }
 0x185   : > { %v1737_v60 = vadd.f32 %v1736_v17, %v1652_v41  ;;  %v5756_v37 = vsub.f32 %v2376_v34, %v2418_v35  ;;  %4921 = vmatprep.subr.mxu0 %v2418_v35 }
 0x186   : > { %4922 = vmatpush3.msra.mxu0 %v2418_v35 }
 0x187   : > { %v5759_v39 = vand.u32 4294901760, %v5756_v37 }
 0x188   : > { %v4878_v18 = vpop.f32.mrf.mxu1 }
 0x189   : > { %v1822_v56 = vadd.f32 %v4878_v18, %v1743_v1  ;;  %v2508_v41 = vsub.f32 %v5756_v37, %v5759_v39 }
 0x18a   : > { %v4885_v19 = vpop.f32.mrf.mxu0  ;;  %v1815_v20 = vpop.f32.mrf.mxu1 }
 0x18b   : > { %v1816_v2 = vadd.f32 %v1815_v20, %v1737_v60  ;;  %v2349_v14 = vsel %vm282_vm0, %v1822_v56, 0.0  ;;  %v2509_v43 = vand.u32 4294901760, %v2508_v41 }
 0x18c   : > { %v1910_v24 = vpop.f32.mrf.mxu0 }
 0x18d   : > { %v2342_v11 = vsel %vm282_vm0, %v1816_v2, 0.0  ;;  %4928 = vmatprep.subr.mxu1 %v2509_v43 }
 0x18e   : > { %v2343_v16 = vadd.f32 %v2342_v11, %v2341_v6  ;;  %4929 = vmatpush3.msra.mxu1 %v2509_v43 }
 0x190   : > { %v4892_v25 = vpop.f32.mrf.mxu1 }
 0x191   : > { %v2008_v36 = vadd.f32 %v4892_v25, %v4885_v19  ;;  %v2350_v19 = vadd.f32 %v2349_v14, %v2348_v15  ;;  %v2379_v14 = vld [vmem:[%s5752_s22 + $0x20] sm:$0xff] }
 0x192   : > { %v2001_v32 = vpop.f32.mrf.mxu1  ;;  %v4899_v33 = vpop.f32.mrf.mxu0  ;;  %v5834_v15 = vand.u32 4294901760, %v2379_v14 }
 0x193   : > { %v2002_v42 = vadd.f32 %v2001_v32, %v1910_v24  ;;  %v2091_v48 = vadd.f32 %v4899_v33, %v2008_v36  ;;  %v2375_v36 = vld [vmem:[%s5752_s22] sm:$0xff] }
 0x194   : > { %v2083_v44 = vpop.f32.mrf.mxu0  ;;  %v2421_v38 = vand.u32 4294901760, %v2375_v36 }
 0x195   : > { %v2084_v62 = vadd.f32 %v2083_v44, %v2002_v42 }
 0x196   : > { %v5761_v40 = vsub.f32 %v2375_v36, %v2421_v38  ;;  %4923 = vmatprep.subr.mxu0 %v2421_v38 }
 0x197   : > { %4924 = vmatpush3.msra.mxu0 %v2421_v38 }
 0x198   : > { %v4906_v45 = vpop.f32.mrf.mxu1  ;;  %v5766_v42 = vand.u32 4294901760, %v5761_v40  ;;  %4935 = vmatprep.subr.mxu0 %v5756_v37 }
 0x199   : > { %v2174_v63 = vadd.f32 %v4906_v45, %v2091_v48  ;;  %v2378_v48 = vld [vmem:[%s5752_s22 + $0x18] sm:$0xff] }
 0x19a   : > { %v2165_v52 = vpop.f32.mrf.mxu1  ;;  %v4913_v53 = vpop.f32.mrf.mxu0  ;;  %v2515_v44 = vsub.f32 %v5761_v40, %v5766_v42  ;;  %v5772_v51 = vand.u32 4294901760, %v2378_v48 }
 0x19b   : > { %v2166_v55 = vadd.f32 %v2165_v52, %v2084_v62  ;;  %v2257_v3 = vadd.f32 %v4913_v53, %v2174_v63  ;;  %v2377_v52 = vld [vmem:[%s5752_s22 + $0x10] sm:$0xff] }
 0x19c   : > { %v2250_v4 = vpop.f32.mrf.mxu0  ;;  %v2516_v45 = vand.u32 4294901760, %v2515_v44  ;;  %v5776_v60 = vand.u32 4294901760, %v2377_v52  ;;  %v5781_v50 = vsub.f32 %v2378_v48, %v5772_v51 }
 0x19d   : > { %v2251_v54 = vadd.f32 %v2250_v4, %v2166_v55 }
 0x19e   : > { %4930 = vmatprep.subr.mxu1 %v2516_v45  ;;  %v5789_v2 = vsub.f32 %v2377_v52, %v5776_v60  ;;  %v5797_v5 = vand.u32 4294901760, %v5781_v50 }
 0x19f   : > { %4931 = vmatpush3.msra.mxu1 %v2516_v45 }
 0x1a0   : > { %v4920_v8 = vpop.f32.mrf.mxu1  ;;  %4942 = vmatprep.subr.mxu1 %v2418_v35  ;;  %v3010_v10 = vsub.f32 %v5781_v50, %v5797_v5 }
 0x1a1   : > { %v2336_v61 = vadd.f32 %v4920_v8, %v2257_v3  ;;  %v5807_v3 = vand.u32 4294901760, %v5789_v2 }
 0x1a2   : > { %v2329_v12 = vpop.f32.mrf.mxu1 }
 0x1a3   : > { %v2330_v59 = vadd.f32 %v2329_v12, %v2251_v54  ;;  %v2351_v17 = vsel %vm282_vm0, %v2336_v61, 0.0  ;;  %v3017_v54 = vsub.f32 %v5789_v2, %v5807_v3  ;;  %v2380_v61 = vld [vmem:[%s5752_s22 + $0x28] sm:$0xff]  ;;  %v3011_v12 = vand.u32 4294901760, %v3010_v10 }
 0x1a4   : > { %v2352_v22 = vadd.f32 %v2351_v17, %v2350_v19  ;;  %v5827_v13 = vand.u32 4294901760, %v2380_v61  ;;  %v5846_v17 = vsub.f32 %v2379_v14, %v5834_v15 }
 0x1a5   : > { %v2344_v18 = vsel %vm282_vm0, %v2330_v59, 0.0  ;;  %v3018_v59 = vand.u32 4294901760, %v3017_v54 }
 0x1a6   : > { %v2345_v20 = vadd.f32 %v2344_v18, %v2343_v16  ;;  %v2356_v23 = vsel %vm282_vm0, %v2352_v22, -inf  ;;  %v5839_v16 = vsub.f32 %v2380_v61, %v5827_v13  ;;  %v5860_v19 = vand.u32 4294901760, %v5846_v17 }
 0x1a8   : > { %v2353_v21 = vsel %vm282_vm0, %v2345_v20, -inf  ;;  %v5851_v18 = vand.u32 4294901760, %v5839_v16 }
 0x1a9   : > { %2354 = vmax.xlane.f32.xlu0 %v2353_v21  ;;  %v3519_v21 = vsub.f32 %v5846_v17, %v5860_v19 }
 0x1ad   : > { %2357 = vmax.xlane.f32.xlu0 %v2356_v23 }
 0x232   : > { %v2355_v24 = vpop.xlane.xlu0 %2354 }
 0x233   : > { %v2359_v25 = vsub.f32 %v2345_v20, %v2355_v24  ;;  %v3512_v20 = vsub.f32 %v5839_v16, %v5851_v18 }
 0x235   : > { %v2361_v26 = vmul.f32 1.442695, %v2359_v25  ;;  %v3513_v23 = vand.u32 4294901760, %v3512_v20  ;;  %v2381_v25 = vld [vmem:[%s5752_s22 + $0x30] sm:$0xff] }
 0x236   : > { %v2358_v27 = vpop.xlane.xlu0 %2357 }
 0x237   : > { %5149 = vpow2.f32 %v2361_v26  ;;  %v2360_v28 = vsub.f32 %v2352_v22, %v2358_v27  ;;  %v2382_v22 = vld [vmem:[%s5752_s22 + $0x38] sm:$0xff]  ;;  %v3520_v26 = vand.u32 4294901760, %v3519_v21  ;;  %v5888_v27 = vand.u32 4294901760, %v2381_v25 }
 0x238   : > { %v5881_v24 = vand.u32 4294901760, %v2382_v22 }
 0x239   : > { %v2363_v29 = vmul.f32 1.442695, %v2360_v28 }
 0x23a   : > { %v5893_v28 = vsub.f32 %v2382_v22, %v5881_v24 }
 0x23b   : > { %5151 = vpow2.f32 %v2363_v29  ;;  %v5900_v29 = vsub.f32 %v2381_v25, %v5888_v27 }
 0x244   : > { %v5150_v30 = vpop.eup %5149 }
 0x245   : > { %v2365_v31 = vsel %vm282_vm0, %v5150_v30, 0.0 }
 0x246   : > { %2366 = vadd.xlane.f32.xlu1 %v2365_v31  ;;  %v5914_v31 = vand.u32 4294901760, %v5900_v29 }
 0x248   : > { %v5152_v32 = vpop.eup %5151 }
 0x249   : > { %v2368_v33 = vsel %vm282_vm0, %v5152_v32, 0.0 }
 0x24a   : > { %2369 = vadd.xlane.f32.xlu1 %v2368_v33  ;;  %v4021_v33 = vsub.f32 %v5900_v29, %v5914_v31 }
 0x2cf   : > { %v2367_v46 = vpop.xlane.xlu1 %2366 }
 0x2d0   : > { %5153 = vrcp.f32 %v2367_v46 }
 0x2d3   : > { %v2370_v47 = vpop.xlane.xlu1 %2369 }
 0x2d4   : > { %5155 = vrcp.f32 %v2370_v47 }
 0x2dd   : > { %v5154_v49 = vpop.eup %5153 }
 0x2de   : > { %v2372_v53 = vmul.f32 %v5154_v49, %v5150_v30  ;;  %v5905_v30 = vand.u32 4294901760, %v5893_v28 }
 0x2e0   : > { %v2384_v58 = vsel %vm282_vm0, %v2372_v53, 0 }
 0x2e1   : > { %v5156_v62 = vpop.eup %5155  ;;  %v5778_v63 = vand.u32 4294901760, %v2384_v58 }
 0x2e2   : > { %v2374_v57 = vmul.f32 %v5156_v62, %v5152_v32  ;;  %v4014_v32 = vsub.f32 %v5893_v28, %v5905_v30 }
 0x2e3   : > { %v5784_v0 = vsub.f32 %v2384_v58, %v5778_v63  ;;  %4932 = vmatprep.mubr.f32.mxu1 %v5778_v63 }
 0x2e4   : > { %v2387_v1 = vsel %vm282_vm0, %v2374_v57, 0  ;;  %v4015_v34 = vand.u32 4294901760, %v4014_v32 }
 0x2e5   : > { %v5791_v55 = vand.u32 4294901760, %v2387_v1  ;;  %v5794_v4 = vand.u32 4294901760, %v5784_v0 }
 0x2e7   : > { %v5800_v7 = vsub.f32 %v2387_v1, %v5791_v55  ;;  %4933 = vmatmul.mubr.f32.vlgmr.msra.gmra.mxu1 %v5791_v55  ;;  %v2459_v56 = vsub.f32 %v5784_v0, %v5794_v4 }
 0x2e8   : > { %4943 = vmatpush3.msra.mxu1 %v2418_v35  ;;  %4946 = vmatprep.mubr.f32.mxu1 %v5794_v4 }
 0x2e9   : > { %4944 = vmatprep.subr.mxu1 %v2421_v38  ;;  %v5809_v9 = vand.u32 4294901760, %v2459_v56  ;;  %v5812_v8 = vand.u32 4294901760, %v5800_v7 }
 0x2ea   : > { %4945 = vmatpush3.msra.mxu1 %v2421_v38 }
 0x2eb   : > { %4925 = vmatprep.mubr.f32.mxu0 %v5809_v9  ;;  %4947 = vmatmul.mubr.f32.vlgmr.msra.gmra.mxu1 %v5812_v8  ;;  %v2469_v11 = vsub.f32 %v5800_v7, %v5812_v8 }
 0x2ec   : > { %4956 = vmatprep.subr.mxu1 %v2418_v35  ;;  %4960 = vmatprep.mubr.f32.mxu1 %v5778_v63 }
 0x2ed   : > { %4957 = vmatpush3.msra.mxu1 %v2418_v35  ;;  %v5824_v6 = vand.u32 4294901760, %v2469_v11  ;;  %v4022_v35 = vand.u32 4294901760, %v4021_v33 }
 0x2ee   : > { %4958 = vmatprep.subr.mxu1 %v2421_v38 }
 0x2ef   : > { %4959 = vmatpush3.msra.mxu1 %v2421_v38  ;;  %4926 = vmatmul.mubr.f32.vlgmr.msra.gmra.mxu0 %v5824_v6 }
 0x2f0   : > { %4936 = vmatpush3.msra.mxu0 %v5756_v37  ;;  %4961 = vmatmul.mubr.f32.vlgmr.msra.gmra.mxu1 %v5791_v55 }
 0x2f1   : > { %4970 = vmatprep.subr.mxu1 %v3011_v12  ;;  %4937 = vmatprep.subr.mxu0 %v5761_v40 }
 0x2f2   : > { %4939 = vmatprep.mubr.f32.mxu0 %v5784_v0  ;;  %4971 = vmatpush3.msra.mxu1 %v3011_v12 }
 0x2f3   : > { %4974 = vmatprep.mubr.f32.mxu1 %v5778_v63  ;;  %4938 = vmatpush3.msra.mxu0 %v5761_v40 }
 0x2f4   : > { %4972 = vmatprep.subr.mxu1 %v3018_v59  ;;  %4949 = vmatprep.subr.mxu0 %v5759_v39 }
 0x2f5   : > { %4973 = vmatpush3.msra.mxu1 %v3018_v59  ;;  %4940 = vmatmul.mubr.f32.vlgmr.msra.gmra.mxu0 %v5800_v7 }
 0x2f6   : > { %4950 = vmatpush3.msra.mxu0 %v5759_v39  ;;  %4975 = vmatmul.mubr.f32.vlgmr.msra.gmra.mxu1 %v5791_v55 }
 0x2f7   : > { %4984 = vmatprep.subr.mxu1 %v5772_v51  ;;  %4951 = vmatprep.subr.mxu0 %v5766_v42 }
 0x2f8   : > { %4953 = vmatprep.mubr.f32.mxu0 %v5778_v63  ;;  %4985 = vmatpush3.msra.mxu1 %v5772_v51 }
 0x2f9   : > { %4988 = vmatprep.mubr.f32.mxu1 %v5794_v4  ;;  %4952 = vmatpush3.msra.mxu0 %v5766_v42 }
 0x2fa   : > { %4986 = vmatprep.subr.mxu1 %v5776_v60  ;;  %4963 = vmatprep.subr.mxu0 %v5772_v51 }
 0x2fb   : > { %4987 = vmatpush3.msra.mxu1 %v5776_v60  ;;  %4954 = vmatmul.mubr.f32.vlgmr.msra.gmra.mxu0 %v5791_v55 }
 0x2fc   : > { %4964 = vmatpush3.msra.mxu0 %v5772_v51  ;;  %4989 = vmatmul.mubr.f32.vlgmr.msra.gmra.mxu1 %v5812_v8 }
 0x2fd   : > { %4998 = vmatprep.subr.mxu1 %v5772_v51  ;;  %4965 = vmatprep.subr.mxu0 %v5776_v60 }
 0x2fe   : > { %4967 = vmatprep.mubr.f32.mxu0 %v5809_v9  ;;  %4999 = vmatpush3.msra.mxu1 %v5772_v51 }
 0x2ff   : > { %5002 = vmatprep.mubr.f32.mxu1 %v5778_v63  ;;  %4966 = vmatpush3.msra.mxu0 %v5776_v60 }
 0x300   : > { %5000 = vmatprep.subr.mxu1 %v5776_v60  ;;  %4977 = vmatprep.subr.mxu0 %v5781_v50 }
 0x301   : > { %5001 = vmatpush3.msra.mxu1 %v5776_v60  ;;  %4968 = vmatmul.mubr.f32.vlgmr.msra.gmra.mxu0 %v5824_v6 }
 0x302   : > { %4978 = vmatpush3.msra.mxu0 %v5781_v50  ;;  %5003 = vmatmul.mubr.f32.vlgmr.msra.gmra.mxu1 %v5791_v55 }
 0x303   : > { %5012 = vmatprep.subr.mxu1 %v3513_v23  ;;  %4979 = vmatprep.subr.mxu0 %v5789_v2 }
 0x304   : > { %4981 = vmatprep.mubr.f32.mxu0 %v5784_v0  ;;  %5013 = vmatpush3.msra.mxu1 %v3513_v23 }
 0x305   : > { %5016 = vmatprep.mubr.f32.mxu1 %v5778_v63  ;;  %4980 = vmatpush3.msra.mxu0 %v5789_v2 }
 0x306   : > { %5014 = vmatprep.subr.mxu1 %v3520_v26  ;;  %4991 = vmatprep.subr.mxu0 %v5797_v5 }
 0x307   : > { %5015 = vmatpush3.msra.mxu1 %v3520_v26  ;;  %4982 = vmatmul.mubr.f32.vlgmr.msra.gmra.mxu0 %v5800_v7 }
 0x308   : > { %4992 = vmatpush3.msra.mxu0 %v5797_v5  ;;  %5017 = vmatmul.mubr.f32.vlgmr.msra.gmra.mxu1 %v5791_v55 }
 0x309   : > { %5026 = vmatprep.subr.mxu1 %v5827_v13  ;;  %4993 = vmatprep.subr.mxu0 %v5807_v3 }
 0x30a   : > { %4995 = vmatprep.mubr.f32.mxu0 %v5778_v63  ;;  %5027 = vmatpush3.msra.mxu1 %v5827_v13 }
 0x30b   : > { %5030 = vmatprep.mubr.f32.mxu1 %v5794_v4  ;;  %4994 = vmatpush3.msra.mxu0 %v5807_v3 }
 0x30c   : > { %5028 = vmatprep.subr.mxu1 %v5834_v15  ;;  %5005 = vmatprep.subr.mxu0 %v5827_v13 }
 0x30d   : > { %5029 = vmatpush3.msra.mxu1 %v5834_v15  ;;  %4996 = vmatmul.mubr.f32.vlgmr.msra.gmra.mxu0 %v5791_v55 }
 0x30e   : > { %5006 = vmatpush3.msra.mxu0 %v5827_v13  ;;  %5031 = vmatmul.mubr.f32.vlgmr.msra.gmra.mxu1 %v5812_v8 }
 0x30f   : > { %5040 = vmatprep.subr.mxu1 %v5827_v13  ;;  %5007 = vmatprep.subr.mxu0 %v5834_v15 }
 0x310   : > { %5009 = vmatprep.mubr.f32.mxu0 %v5809_v9  ;;  %5041 = vmatpush3.msra.mxu1 %v5827_v13 }
 0x311   : > { %5044 = vmatprep.mubr.f32.mxu1 %v5778_v63  ;;  %5008 = vmatpush3.msra.mxu0 %v5834_v15 }
 0x312   : > { %5042 = vmatprep.subr.mxu1 %v5834_v15  ;;  %5019 = vmatprep.subr.mxu0 %v5839_v16 }
 0x313   : > { %5043 = vmatpush3.msra.mxu1 %v5834_v15  ;;  %5010 = vmatmul.mubr.f32.vlgmr.msra.gmra.mxu0 %v5824_v6 }
 0x314   : > { %5020 = vmatpush3.msra.mxu0 %v5839_v16  ;;  %5045 = vmatmul.mubr.f32.vlgmr.msra.gmra.mxu1 %v5791_v55 }
 0x315   : > { %5054 = vmatprep.subr.mxu1 %v4015_v34  ;;  %5021 = vmatprep.subr.mxu0 %v5846_v17 }
 0x316   : > { %5023 = vmatprep.mubr.f32.mxu0 %v5784_v0  ;;  %5055 = vmatpush3.msra.mxu1 %v4015_v34 }
 0x317   : > { %5058 = vmatprep.mubr.f32.mxu1 %v5778_v63  ;;  %5022 = vmatpush3.msra.mxu0 %v5846_v17 }
 0x318   : > { %5056 = vmatprep.subr.mxu1 %v4022_v35  ;;  %5033 = vmatprep.subr.mxu0 %v5851_v18 }
 0x319   : > { %5057 = vmatpush3.msra.mxu1 %v4022_v35  ;;  %5024 = vmatmul.mubr.f32.vlgmr.msra.gmra.mxu0 %v5800_v7 }
 0x31a   : > { %5034 = vmatpush3.msra.mxu0 %v5851_v18  ;;  %5059 = vmatmul.mubr.f32.vlgmr.msra.gmra.mxu1 %v5791_v55 }
 0x31b   : > { %5068 = vmatprep.subr.mxu1 %v5881_v24  ;;  %5035 = vmatprep.subr.mxu0 %v5860_v19 }
 0x31c   : > { %5037 = vmatprep.mubr.f32.mxu0 %v5778_v63  ;;  %5069 = vmatpush3.msra.mxu1 %v5881_v24 }
 0x31d   : > { %5072 = vmatprep.mubr.f32.mxu1 %v5794_v4  ;;  %5036 = vmatpush3.msra.mxu0 %v5860_v19 }
 0x31e   : > { %5070 = vmatprep.subr.mxu1 %v5888_v27  ;;  %5047 = vmatprep.subr.mxu0 %v5881_v24 }
 0x31f   : > { %5071 = vmatpush3.msra.mxu1 %v5888_v27  ;;  %5038 = vmatmul.mubr.f32.vlgmr.msra.gmra.mxu0 %v5791_v55 }
 0x320   : > { %5048 = vmatpush3.msra.mxu0 %v5881_v24  ;;  %5073 = vmatmul.mubr.f32.vlgmr.msra.gmra.mxu1 %v5812_v8 }
 0x321   : > { %5082 = vmatprep.subr.mxu1 %v5881_v24  ;;  %5049 = vmatprep.subr.mxu0 %v5888_v27 }
 0x322   : > { %5051 = vmatprep.mubr.f32.mxu0 %v5809_v9  ;;  %5083 = vmatpush3.msra.mxu1 %v5881_v24 }
 0x323   : > { %5086 = vmatprep.mubr.f32.mxu1 %v5778_v63  ;;  %5050 = vmatpush3.msra.mxu0 %v5888_v27 }
 0x324   : > { %5084 = vmatprep.subr.mxu1 %v5888_v27  ;;  %5061 = vmatprep.subr.mxu0 %v5893_v28 }
 0x325   : > { %5085 = vmatpush3.msra.mxu1 %v5888_v27  ;;  %5052 = vmatmul.mubr.f32.vlgmr.msra.gmra.mxu0 %v5824_v6 }
 0x326   : > { %5062 = vmatpush3.msra.mxu0 %v5893_v28  ;;  %5087 = vmatmul.mubr.f32.vlgmr.msra.gmra.mxu1 %v5791_v55 }
 0x327   : > { %5063 = vmatprep.subr.mxu0 %v5900_v29  ;;  %5065 = vmatprep.mubr.f32.mxu0 %v5784_v0 }
 0x328   : > { %5064 = vmatpush3.msra.mxu0 %v5900_v29 }
 0x329   : > { %5075 = vmatprep.subr.mxu0 %v5905_v30  ;;  %5066 = vmatmul.mubr.f32.vlgmr.msra.gmra.mxu0 %v5800_v7 }
 0x32a   : > { %5076 = vmatpush3.msra.mxu0 %v5905_v30  ;;  %5079 = vmatprep.mubr.f32.mxu0 %v5778_v63 }
 0x32b   : > { %5077 = vmatprep.subr.mxu0 %v5914_v31 }
 0x32c   : > { %5078 = vmatpush3.msra.mxu0 %v5914_v31 }
 0x32d   : > { %5080 = vmatmul.mubr.f32.vlgmr.msra.gmra.mxu0 %v5791_v55 }
 0x3a7   : > { %v4934_v36 = vpop.f32.mrf.mxu1 }
 0x3a9   : > { %v2553_v37 = vpop.f32.mrf.mxu1 }
 0x3ab   : > { %v4948_v38 = vpop.f32.mrf.mxu1 }
 0x3ad   : > { %v2717_v39 = vpop.f32.mrf.mxu1 }
 0x3af   : > { %v4927_v40 = vpop.f32.mrf.mxu0 }
 0x3b0   : > { %v4962_v41 = vpop.f32.mrf.mxu1  ;;  %v2560_v44 = vadd.f32 %v4934_v36, %v4927_v40 }
 0x3b1   : > { %v2462_v42 = vpop.f32.mrf.mxu0 }
 0x3b2   : > { %v2881_v43 = vpop.f32.mrf.mxu1  ;;  %v2554_v46 = vadd.f32 %v2553_v37, %v2462_v42 }
 0x3b5   : > { %v4941_v45 = vpop.f32.mrf.mxu0 }
 0x3b6   : > { %v2643_v47 = vadd.f32 %v4941_v45, %v2560_v44  ;;  %v4976_v48 = vpop.f32.mrf.mxu1 }
 0x3b7   : > { %v2635_v49 = vpop.f32.mrf.mxu0 }
 0x3b8   : > { %v2636_v51 = vadd.f32 %v2635_v49, %v2554_v46  ;;  %v3055_v52 = vpop.f32.mrf.mxu1  ;;  %v2726_v53 = vadd.f32 %v4948_v38, %v2643_v47 }
 0x3ba   : > { %v2718_v58 = vadd.f32 %v2717_v39, %v2636_v51 }
 0x3bb   : > { %v4955_v60 = vpop.f32.mrf.mxu0 }
 0x3bc   : > { %v2809_v62 = vadd.f32 %v4955_v60, %v2726_v53  ;;  %v4990_v63 = vpop.f32.mrf.mxu1 }
 0x3bd   : > { %v2802_v50 = vpop.f32.mrf.mxu0 }
 0x3be   : > { %v2888_v57 = vadd.f32 %v4962_v41, %v2809_v62  ;;  %v2803_v0 = vadd.f32 %v2802_v50, %v2718_v58  ;;  %v3219_v1 = vpop.f32.mrf.mxu1 }
 0x3c0   : > { %4398 = vst.msk [vmem:[%s5979_s17 + $0x8] sm:$0xff] %vm282_vm0, %v2888_v57  ;;  %v2882_v2 = vadd.f32 %v2881_v43, %v2803_v0 }
 0x3c1   : > { %v4969_v55 = vpop.f32.mrf.mxu0 }
 0x3c2   : > { %4397 = vst.msk [vmem:[%s5979_s17] sm:$0xff] %vm282_vm0, %v2882_v2  ;;  %v5004_v4 = vpop.f32.mrf.mxu1  ;;  %v3062_v56 = vadd.f32 %v4976_v48, %v4969_v55 }
 0x3c3   : > { %v2964_v5 = vpop.f32.mrf.mxu0 }
 0x3c4   : > { %v3383_v7 = vpop.f32.mrf.mxu1  ;;  %v3056_v9 = vadd.f32 %v3055_v52, %v2964_v5 }
 0x3c7   : > { %v4983_v3 = vpop.f32.mrf.mxu0 }
 0x3c8   : > { %v3145_v8 = vadd.f32 %v4983_v3, %v3062_v56  ;;  %v5018_v10 = vpop.f32.mrf.mxu1 }
 0x3c9   : > { %v3137_v11 = vpop.f32.mrf.mxu0 }
 0x3ca   : > { %v3138_v54 = vadd.f32 %v3137_v11, %v3056_v9  ;;  %v3557_v61 = vpop.f32.mrf.mxu1  ;;  %v3228_v6 = vadd.f32 %v4990_v63, %v3145_v8 }
 0x3cc   : > { %v3220_v12 = vadd.f32 %v3219_v1, %v3138_v54 }
 0x3cd   : > { %v4997_v13 = vpop.f32.mrf.mxu0 }
 0x3ce   : > { %v3311_v14 = vadd.f32 %v4997_v13, %v3228_v6  ;;  %v5032_v59 = vpop.f32.mrf.mxu1 }
 0x3cf   : > { %v3304_v15 = vpop.f32.mrf.mxu0 }
 0x3d0   : > { %v3390_v16 = vadd.f32 %v5004_v4, %v3311_v14  ;;  %v3305_v17 = vadd.f32 %v3304_v15, %v3220_v12  ;;  %v3721_v18 = vpop.f32.mrf.mxu1 }
 0x3d2   : > { %4400 = vst.msk [vmem:[%s5979_s17 + $0x18] sm:$0xff] %vm282_vm0, %v3390_v16  ;;  %v3384_v19 = vadd.f32 %v3383_v7, %v3305_v17 }
 0x3d3   : > { %v5011_v20 = vpop.f32.mrf.mxu0 }
 0x3d4   : > { %4399 = vst.msk [vmem:[%s5979_s17 + $0x10] sm:$0xff] %vm282_vm0, %v3384_v19  ;;  %v5046_v21 = vpop.f32.mrf.mxu1  ;;  %v3564_v23 = vadd.f32 %v5018_v10, %v5011_v20 }
 0x3d5   : > { %v3466_v22 = vpop.f32.mrf.mxu0 }
 0x3d6   : > { %v3885_v24 = vpop.f32.mrf.mxu1  ;;  %v3558_v26 = vadd.f32 %v3557_v61, %v3466_v22 }
 0x3d9   : > { %v5025_v25 = vpop.f32.mrf.mxu0 }
 0x3da   : > { %v3647_v27 = vadd.f32 %v5025_v25, %v3564_v23  ;;  %v5060_v31 = vpop.f32.mrf.mxu1 }
 0x3db   : > { %v3639_v28 = vpop.f32.mrf.mxu0 }
 0x3dc   : > { %v3640_v29 = vadd.f32 %v3639_v28, %v3558_v26  ;;  %v3730_v30 = vadd.f32 %v5032_v59, %v3647_v27  ;;  %v4059_v35 = vpop.f32.mrf.mxu1 }
 0x3de   : > { %v3722_v32 = vadd.f32 %v3721_v18, %v3640_v29 }
 0x3df   : > { %v5039_v33 = vpop.f32.mrf.mxu0 }
 0x3e0   : > { %v3813_v34 = vadd.f32 %v5039_v33, %v3730_v30  ;;  %v5074_v40 = vpop.f32.mrf.mxu1 }
 0x3e1   : > { %v3806_v36 = vpop.f32.mrf.mxu0 }
 0x3e2   : > { %v3892_v37 = vadd.f32 %v5046_v21, %v3813_v34  ;;  %v3807_v38 = vadd.f32 %v3806_v36, %v3722_v32  ;;  %v4223_v44 = vpop.f32.mrf.mxu1 }
 0x3e4   : > { %4402 = vst.msk [vmem:[%s5979_s17 + $0x28] sm:$0xff] %vm282_vm0, %v3892_v37  ;;  %v3886_v39 = vadd.f32 %v3885_v24, %v3807_v38 }
 0x3e5   : > { %v5053_v41 = vpop.f32.mrf.mxu0 }
 0x3e6   : > { %4401 = vst.msk [vmem:[%s5979_s17 + $0x20] sm:$0xff] %vm282_vm0, %v3886_v39  ;;  %v4066_v43 = vadd.f32 %v5060_v31, %v5053_v41  ;;  %v5088_v52 = vpop.f32.mrf.mxu1 }
 0x3e7   : > { %v3968_v42 = vpop.f32.mrf.mxu0 }
 0x3e8   : > { %v4060_v46 = vadd.f32 %v4059_v35, %v3968_v42  ;;  %v4387_v57 = vpop.f32.mrf.mxu1 }
 0x3e9   : > { %v5067_v45 = vpop.f32.mrf.mxu0 }
 0x3ea   : > { %v4149_v47 = vadd.f32 %v5067_v45, %v4066_v43 }
 0x3eb   : > { %v4141_v48 = vpop.f32.mrf.mxu0 }
 0x3ec   : > { %v4142_v49 = vadd.f32 %v4141_v48, %v4060_v46  ;;  %v4232_v51 = vadd.f32 %v5074_v40, %v4149_v47 }
 0x3ed   : > { %v5081_v53 = vpop.f32.mrf.mxu0 }
 0x3ee   : > { %v4315_v58 = vadd.f32 %v5081_v53, %v4232_v51  ;;  %v4224_v60 = vadd.f32 %v4223_v44, %v4142_v49 }
 0x3ef   : > { %v4308_v62 = vpop.f32.mrf.mxu0 }
 0x3f0   : > { %v4394_v63 = vadd.f32 %v5088_v52, %v4315_v58  ;;  %v4309_v50 = vadd.f32 %v4308_v62, %v4224_v60 }
 0x3f2   : > { %4404 = vst.msk [vmem:[%s5979_s17 + $0x38] sm:$0xff] %vm282_vm0, %v4394_v63  ;;  %v4388_v0 = vadd.f32 %v4387_v57, %v4309_v50 }
 0x3f4   : > { %4403 = vst.msk [vmem:[%s5979_s17 + $0x30] sm:$0xff] %vm282_vm0, %v4388_v0 }
 0x3f5   : > { %5254 = shalt.err (!%p5251_p6)
}
 0x3f6   : > { %s5255_s7 = scalar_lea.hbm %s5998_s30, 1024  ;;  %s5259_s10 = scalar_lea.hbm %s6050_s3, 2048 }
 0x3f7   : > { %p5256_p12 = scmp.ne.s32.totalorder %s5998_s30, %s5255_s7  ;;  %p5260_p4 = scmp.lt.s32.totalorder %s5998_s30, %s6050_s3 }
 0x3f8   : > { %p5261_p2 = scmp.lt.s32.totalorder %s5259_s10, %s5255_s7 }
 0x3f9   : > { %p5257_p0 = pnand %p5256_p12, %p6072_p7 }
 0x3fa   : > { %p5262_p5 = por %p5261_p2, %p5260_p4 }
 0x3fb   : > { %p5258_p11 = pneg %p5257_p0 }
 0x3fd   : > { %p5263_p13 = pnand %p5262_p5, %p5258_p11 }
 0x3ff   : > { %5266 = shalt.err (!%p5263_p13)
}
 0x400   : > { %s5317_s29 = smov 128   ;;  %s5318_s9 = smov 8  }
 0x401   : > { %5095 = dma.vmem_to_hbm [thread:$0]  (%p6072_p7), %s6000_s25, 1024, %s5998_s30, %s4406_s16, %s5317_s29, %s5317_s29, %s5318_s9  }
 0x402 PF: > { %s4434_s22 = sand.u32 1, %s5297_s12   ;;  %p6073_p8 = scmp.ne.s32.totalorder %s6061_s24, 0 }
 0x403   : > { %p6074_p10 = scmp.ge.s32.totalorder %s5309_s15, 2  ;;  %s4435_s17 = scalar_lea.sflag [#allocation4], %s4434_s22 }
 0x405   : > { %p5108_p1 = pnand %p6074_p10, %p6073_p8 }
 0x407   : > { %p5109_p3 = pneg %p5108_p1 }
 0x409   : > { %5292 = dma.done.wait (%p5109_p3), %s4435_s17, 1024  }
 0x40a   : > { %5294 = vsyncadd (%p5109_p3), %s4435_s17, 4294966272  ;;  %p19_p9 = scmp.ge.s32.totalorder %s5364_s18, 4   ;;  %s6075_s12 = smov %s5301_s13 }
 0x40b   : > { %s6076_s13 = smov %s5305_s14  ;;  %s6077_s14 = smov %s5376_s21 }
 0x40c   : > { %s6078_s15 = smov %s5364_s18  ;;  %21 = sbr.rel (!%p19_p9) target bundleno = 10 (0xa), region = 101 }
 0x411   :  { %4440 = vsyncpa [#allocation3], 1 }
 0x412   :  { %4442 = vsyncpa [#allocation3 + $0x1], 1 }
 0x413   :  { %4443 = vsyncpa [#allocation6], 1 }
 0x414   :  { %4445 = vsyncpa [#allocation6 + $0x1], 1 }
 0x415   :  { %4446 = vsyncpa [#allocation4], 1 }
 0x416   :  { %4448 = vsyncpa [#allocation4 + $0x1], 1 }

</bundles_post_ra>
